<compile_context>
chip_gen: v6e
topology: v6e:2x2x1
jax: 0.10.0
libtpu: 0.0.40
codegen_flags: <defaults>
</compile_context>

<pallas_src>
import functools

import jax
import jax.numpy as jnp
from jax import lax
from jax.experimental import pallas as pl
from jax.experimental.pallas import tpu as pltpu


def _loss_kernel(o_ref, t_ref, pool_ref, part_ref, *, TR, rows, C, L,
                 patch_size, lambda_guid, lambda_corr, lambda_patch):
    f32 = jnp.float32
    o = o_ref[...].astype(f32)                   # (TR, L)
    t = t_ref[...].astype(f32)                   # (TR, L)
    pool = pool_ref[...]                         # (L, P) 0/1 patch membership

    P = L // patch_size
    B = rows // C
    n_rec = B * (C - 2)
    n_guid = B * 2

    # ---- row masks from the *global* row index (guidance = channels 0,1) ----
    blk = pl.program_id(0)
    grow = blk * TR + lax.broadcasted_iota(jnp.int32, (TR, 1), 0)
    valid = grow < rows                          # zero-padded rows -> False
    is_guid = (grow % C) < 2
    rec_mask = jnp.where(jnp.logical_and(valid, jnp.logical_not(is_guid)),
                         f32(1.0), f32(0.0))     # (TR, 1)

    # ---- single moment pass: per-patch segment sums on the (idle) MXU --------
    s_oo = jnp.dot(o * o, pool, preferred_element_type=f32)      # (TR, P)
    s_tt = jnp.dot(t * t, pool, preferred_element_type=f32)
    s_ot = jnp.dot(o * t, pool, preferred_element_type=f32)
    if lambda_corr > 0 or lambda_patch > 0:
        s_o = jnp.dot(o, pool, preferred_element_type=f32)
        s_t = jnp.dot(t, pool, preferred_element_type=f32)

    # ---- fused reconstruction (channels 2:) + guidance (channels :2) MSE -----
    mse_row = jnp.sum(s_oo - 2.0 * s_ot + s_tt, axis=-1, keepdims=True)
    w_rec = 1.0 / (n_rec * L)
    w_guid = (lambda_guid / (n_guid * L)) if lambda_guid > 0 else 0.0
    w_mse = jnp.where(is_guid, f32(w_guid), f32(w_rec))
    w_mse = jnp.where(valid, w_mse, f32(0.0))
    partial = jnp.sum(w_mse * mse_row)

    # ---- correlation loss (recon rows): 1 - mean Pearson r over time --------
    # TODO(synk): correlation_loss is undefined in the reference module;
    # implemented as 1 - mean(Pearson r).  The constant "+ lambda_corr * 1" is
    # added in the wrapper; the kernel contributes only -lambda_corr*mean(r).
    if lambda_corr > 0:
        S_o = jnp.sum(s_o, axis=-1, keepdims=True)               # (TR, 1)
        S_t = jnp.sum(s_t, axis=-1, keepdims=True)
        S_oo = jnp.sum(s_oo, axis=-1, keepdims=True)
        S_tt = jnp.sum(s_tt, axis=-1, keepdims=True)
        S_ot = jnp.sum(s_ot, axis=-1, keepdims=True)
        inv_L = f32(1.0 / L)
        cov = S_ot - S_o * S_t * inv_L
        var_o = jnp.maximum(S_oo - S_o * S_o * inv_L, 0.0)
        var_t = jnp.maximum(S_tt - S_t * S_t * inv_L, 0.0)
        den = jnp.sqrt(var_o * var_t) + 1e-8
        r = cov * pl.reciprocal(den, approx=True)
        partial = partial - (lambda_corr / n_rec) * jnp.sum(rec_mask * r)

    # ---- patch-normalized MSE (torch std: ddof=1, eps added to std) ----------
    if lambda_patch > 0:
        inv_n = f32(1.0 / patch_size)
        css_o = jnp.maximum(s_oo - s_o * s_o * inv_n, 0.0)        # sum (o-mu_o)^2
        css_t = jnp.maximum(s_tt - s_t * s_t * inv_n, 0.0)
        ccov = s_ot - s_o * s_t * inv_n
        inv_nm1 = f32(1.0 / (patch_size - 1))
        std_o = jnp.sqrt(css_o * inv_nm1) + 1e-6
        std_t = jnp.sqrt(css_t * inv_nm1) + 1e-6
        io = pl.reciprocal(std_o, approx=True)
        it = pl.reciprocal(std_t, approx=True)
        # sum_patch ((o-mu_o)/s_o - (t-mu_t)/s_t)^2 expanded in moments:
        pm = css_o * (io * io) + css_t * (it * it) - 2.0 * ccov * (io * it)
        pm_row = jnp.sum(pm, axis=-1, keepdims=True)              # (TR, 1)
        partial = partial + (lambda_patch / (n_rec * P * patch_size)) * jnp.sum(
            rec_mask * pm_row)

    # Lane-dense per-block partial (summed in the wrapper).
    part_ref[...] = jnp.broadcast_to(partial.astype(jnp.float32), part_ref.shape)


def patch_aware_recon_loss(outputs, targets, *, patch_size=75, lambda_guid=1.0,
                           lambda_corr=1.0, lambda_patch=1.0, block_rows=None):
    """outputs, targets: (B, C, L) with C > 2 and L % patch_size == 0."""
    B, C, L = outputs.shape
    assert L % patch_size == 0, "Sequence length must be divisible by patch size"
    assert C > 2, "Need at least one reconstruction channel (C > 2)"
    P = L // patch_size
    rows = B * C

    out2d = outputs.reshape(rows, L)      # free, contiguous reshapes
    tgt2d = targets.reshape(rows, L)

    # Row tile: keep each pipelined input block around ~2 MiB so double-buffered
    # inputs + intermediates fit default scoped VMEM on every generation
    # (16 MiB v5e, 32 MiB v6e, 32-of-64 MiB v7x).
    if block_rows is None:
        tr = (2 * 1024 * 1024) // (4 * L)
    else:
        tr = block_rows
    tr = max(8, (tr // 8) * 8)
    if tr >= rows:
        TR, num_blocks = rows, 1          # single full block (no (8,128) issue)
    else:
        TR = tr
        num_blocks = -(-rows // TR)
    padded = num_blocks * TR
    if padded != rows:                    # zero rows contribute exactly 0
        out2d = jnp.pad(out2d, ((0, padded - rows), (0, 0)))
        tgt2d = jnp.pad(tgt2d, ((0, padded - rows), (0, 0)))

    # Static 0/1 patch-membership matrix: segment sums become MXU matmuls.
    patch_id = jnp.arange(L, dtype=jnp.int32) // patch_size
    pool = (patch_id[:, None] == jnp.arange(P, dtype=jnp.int32)[None, :]
            ).astype(jnp.float32)                                  # (L, P)

    kernel = functools.partial(
        _loss_kernel, TR=TR, rows=rows, C=C, L=L, patch_size=patch_size,
        lambda_guid=lambda_guid, lambda_corr=lambda_corr,
        lambda_patch=lambda_patch)

    cost = pl.CostEstimate(
        flops=int(padded * L * (3 + 10 * P) + 30 * padded * P),
        transcendentals=int(4 * padded * P + 2 * padded),
        bytes_accessed=int(2 * padded * L * 4 + L * P * 4
                           + num_blocks * 8 * 128 * 4),
    )

    partials = pl.pallas_call(
        kernel,
        out_shape=jax.ShapeDtypeStruct((num_blocks, 8, 128), jnp.float32),
        grid=(num_blocks,),
        in_specs=[
            pl.BlockSpec((TR, L), lambda i: (i, 0)),
            pl.BlockSpec((TR, L), lambda i: (i, 0)),
            pl.BlockSpec((L, P), lambda i: (0, 0)),   # fetched once (constant)
        ],
        out_specs=pl.BlockSpec((1, 8, 128), lambda i: (i, 0, 0)),
        compiler_params=pltpu.CompilerParams(
            dimension_semantics=("parallel",),
            vmem_limit_bytes=32 * 1024 * 1024),
        cost_estimate=cost,
    )(out2d, tgt2d, pool)

    loss = jnp.sum(partials[:, 0, 0])
    if lambda_corr > 0:
        loss = loss + jnp.float32(lambda_corr)   # the "1 -" in 1 - mean(r)
    return loss


def _reference_loss(outputs, targets, *, patch_size=75, lambda_guid=1.0,
                    lambda_corr=1.0, lambda_patch=1.0):
    """Pure-JAX reference mirroring the PyTorch semantics."""
    o_r = outputs[:, 2:, :].astype(jnp.float32)
    t_r = targets[:, 2:, :].astype(jnp.float32)
    l_rec = jnp.mean((o_r - t_r) ** 2)

    oc = o_r - jnp.mean(o_r, axis=-1, keepdims=True)
    tc = t_r - jnp.mean(t_r, axis=-1, keepdims=True)
    cov = jnp.sum(oc * tc, axis=-1)
    den = jnp.sqrt(jnp.sum(oc * oc, axis=-1) * jnp.sum(tc * tc, axis=-1)) + 1e-8
    l_corr = 1.0 - jnp.mean(cov / den)

    def patchify(x):
        Bx, Cx, Lx = x.shape
        nump = Lx // patch_size
        xp = x.reshape(Bx, Cx, nump, patch_size)
        m = jnp.mean(xp, axis=-1, keepdims=True)
        s = jnp.std(xp, axis=-1, keepdims=True, ddof=1) + 1e-6
        return (xp - m) / s

    l_patch = jnp.mean((patchify(o_r) - patchify(t_r)) ** 2)

    o_g = outputs[:, :2, :].astype(jnp.float32)
    t_g = targets[:, :2, :].astype(jnp.float32)
    l_guid = jnp.mean((o_g - t_g) ** 2)

    return (l_rec + lambda_corr * l_corr + lambda_patch * l_patch
            + lambda_guid * l_guid)


if __name__ == "__main__":
    # Small, module-consistent shapes: B=2, C=6 (2 guidance + 4 recon leads),
    # L=150 (= 2 patches of patch_size=75).
    B, C, L = 2, 6, 150
    key = jax.random.PRNGKey(0)
    k_out, k_tgt = jax.random.split(key)
    outputs = jax.random.normal(k_out, (B, C, L), dtype=jnp.float32)
    targets = jax.random.normal(k_tgt, (B, C, L), dtype=jnp.float32)

    ref = _reference_loss(outputs, targets, patch_size=75)

    # Single-block path (auto tile size).
    loss = jax.block_until_ready(
        patch_aware_recon_loss(outputs, targets, patch_size=75))
    assert jnp.allclose(loss, ref, rtol=1e-3, atol=1e-3), (loss, ref)

    # Multi-block / padded-rows path (forces grid=(2,), TR=8, 4 zero-pad rows).
    loss_tiled = jax.block_until_ready(
        patch_aware_recon_loss(outputs, targets, patch_size=75, block_rows=8))
    assert jnp.allclose(loss_tiled, ref, rtol=1e-3, atol=1e-3), (loss_tiled, ref)

    print("KERNEL_OK")
</pallas_src>

<mosaic_0001>
module attributes {stable_mosaic.version = 11 : i64} {
  func.func @_loss_kernel(%arg0: i32, %arg1: memref<12x150xf32, #tpu.memory_space<vmem>>, %arg2: memref<12x150xf32, #tpu.memory_space<vmem>>, %arg3: memref<150x2xf32, #tpu.memory_space<vmem>>, %arg4: memref<1x8x128xf32, #tpu.memory_space<vmem>>) attributes {dimension_semantics = [#tpu.dimension_semantics<parallel>], iteration_bounds = array<i64: 1>, scalar_prefetch = 0 : i64, scratch_operands = 0 : i64, tpu.core_type = #tpu.core_type<tc>, window_params = [{transform_indices = @transform_0, window_bounds = array<i64: 12, 150>}, {transform_indices = @transform_1, window_bounds = array<i64: 12, 150>}, {pipeline_mode = #tpu.pipeline_mode<synchronous>, transform_indices = @transform_2, window_bounds = array<i64: 150, 2>}, {transform_indices = @transform_3, window_bounds = array<i64: 1, 8, 128>}]} {
    %c0 = arith.constant 0 : index
    %c0_0 = arith.constant 0 : index
    %0 = vector.load %arg1[%c0, %c0_0] : memref<12x150xf32, #tpu.memory_space<vmem>>, vector<12x150xf32>
    %c0_1 = arith.constant 0 : index
    %c0_2 = arith.constant 0 : index
    %1 = vector.load %arg2[%c0_1, %c0_2] : memref<12x150xf32, #tpu.memory_space<vmem>>, vector<12x150xf32>
    %c0_3 = arith.constant 0 : index
    %c0_4 = arith.constant 0 : index
    %2 = vector.load %arg3[%c0_3, %c0_4] : memref<150x2xf32, #tpu.memory_space<vmem>>, vector<150x2xf32>
    %c12_i32 = arith.constant 12 : i32
    %3 = arith.muli %arg0, %c12_i32 : i32
    %4 = tpu.iota {dimensions = array<i32: 0>} : vector<12x1xi32>
    %5 = vector.broadcast %3 : i32 to vector<12x1xi32>
    %6 = arith.addi %5, %4 : vector<12x1xi32>
    %c12_i32_5 = arith.constant 12 : i32
    %7 = vector.broadcast %c12_i32_5 : i32 to vector<12x1xi32>
    %8 = arith.cmpi slt, %6, %7 : vector<12x1xi32>
    %c6_i32 = arith.constant 6 : i32
    %c0_i32 = arith.constant 0 : i32
    %9 = arith.cmpi eq, %c6_i32, %c0_i32 : i32
    %c1_i32 = arith.constant 1 : i32
    %10 = arith.select %9, %c1_i32, %c6_i32 : i32
    %11 = vector.broadcast %10 : i32 to vector<12x1xi32>
    %12 = arith.remsi %6, %11 : vector<12x1xi32>
    %c0_i32_6 = arith.constant 0 : i32
    %13 = vector.broadcast %c0_i32_6 : i32 to vector<12x1xi32>
    %14 = arith.cmpi ne, %12, %13 : vector<12x1xi32>
    %c0_i32_7 = arith.constant 0 : i32
    %15 = vector.broadcast %c0_i32_7 : i32 to vector<12x1xi32>
    %16 = arith.cmpi slt, %12, %15 : vector<12x1xi32>
    %c0_i32_8 = arith.constant 0 : i32
    %17 = arith.cmpi slt, %10, %c0_i32_8 : i32
    %18 = vector.broadcast %17 : i1 to vector<12x1xi1>
    %19 = vector.broadcast %18 : vector<12x1xi1> to vector<12x1xi1>
    %20 = arith.xori %16, %19 : vector<12x1xi1>
    %21 = arith.andi %20, %14 : vector<12x1xi1>
    %22 = vector.broadcast %10 : i32 to vector<12x1xi32>
    %23 = arith.addi %12, %22 : vector<12x1xi32>
    %24 = arith.select %21, %23, %12 : vector<12x1xi1>, vector<12x1xi32>
    %c2_i32 = arith.constant 2 : i32
    %25 = vector.broadcast %c2_i32 : i32 to vector<12x1xi32>
    %26 = arith.cmpi slt, %24, %25 : vector<12x1xi32>
    %cst = arith.constant dense<true> : vector<12x1xi1>
    %27 = arith.xori %26, %cst : vector<12x1xi1>
    %28 = arith.andi %8, %27 : vector<12x1xi1>
    %cst_9 = arith.constant 1.000000e+00 : f32
    %cst_10 = arith.constant 0.000000e+00 : f32
    %29 = vector.broadcast %cst_9 : f32 to vector<12x1xf32>
    %30 = vector.broadcast %cst_10 : f32 to vector<12x1xf32>
    %31 = arith.select %28, %29, %30 : vector<12x1xi1>, vector<12x1xf32>
    %32 = arith.mulf %0, %0 : vector<12x150xf32>
    %cst_11 = arith.constant dense<0.000000e+00> : vector<12x2xf32>
    %33 = tpu.matmul %32, %2, %cst_11 {dimension_numbers = #tpu.dot_dimension_numbers<[1], [0], [0], [1], [0, 0, 1, 1], [], []>} : vector<12x150xf32>, vector<150x2xf32>, vector<12x2xf32> -> vector<12x2xf32>
    %34 = arith.mulf %1, %1 : vector<12x150xf32>
    %cst_12 = arith.constant dense<0.000000e+00> : vector<12x2xf32>
    %35 = tpu.matmul %34, %2, %cst_12 {dimension_numbers = #tpu.dot_dimension_numbers<[1], [0], [0], [1], [0, 0, 1, 1], [], []>} : vector<12x150xf32>, vector<150x2xf32>, vector<12x2xf32> -> vector<12x2xf32>
    %36 = arith.mulf %0, %1 : vector<12x150xf32>
    %cst_13 = arith.constant dense<0.000000e+00> : vector<12x2xf32>
    %37 = tpu.matmul %36, %2, %cst_13 {dimension_numbers = #tpu.dot_dimension_numbers<[1], [0], [0], [1], [0, 0, 1, 1], [], []>} : vector<12x150xf32>, vector<150x2xf32>, vector<12x2xf32> -> vector<12x2xf32>
    %cst_14 = arith.constant dense<0.000000e+00> : vector<12x2xf32>
    %38 = tpu.matmul %0, %2, %cst_14 {dimension_numbers = #tpu.dot_dimension_numbers<[1], [0], [0], [1], [0, 0, 1, 1], [], []>} : vector<12x150xf32>, vector<150x2xf32>, vector<12x2xf32> -> vector<12x2xf32>
    %cst_15 = arith.constant dense<0.000000e+00> : vector<12x2xf32>
    %39 = tpu.matmul %1, %2, %cst_15 {dimension_numbers = #tpu.dot_dimension_numbers<[1], [0], [0], [1], [0, 0, 1, 1], [], []>} : vector<12x150xf32>, vector<150x2xf32>, vector<12x2xf32> -> vector<12x2xf32>
    %cst_16 = arith.constant 2.000000e+00 : f32
    %40 = vector.broadcast %cst_16 : f32 to vector<12x2xf32>
    %41 = arith.mulf %40, %37 : vector<12x2xf32>
    %42 = arith.subf %33, %41 : vector<12x2xf32>
    %43 = arith.addf %42, %35 : vector<12x2xf32>
    %cst_17 = arith.constant dense<0.000000e+00> : vector<12xf32>
    %44 = vector.multi_reduction <add>, %43, %cst_17 [1] : vector<12x2xf32> to vector<12xf32>
    %45 = vector.shape_cast %44 : vector<12xf32> to vector<12x1xf32>
    %cst_18 = arith.constant 0.00166666671 : f32
    %cst_19 = arith.constant 8.33333353E-4 : f32
    %46 = vector.broadcast %cst_18 : f32 to vector<12x1xf32>
    %47 = vector.broadcast %cst_19 : f32 to vector<12x1xf32>
    %48 = arith.select %26, %46, %47 : vector<12x1xi1>, vector<12x1xf32>
    %cst_20 = arith.constant 0.000000e+00 : f32
    %49 = vector.broadcast %cst_20 : f32 to vector<12x1xf32>
    %50 = arith.select %8, %48, %49 : vector<12x1xi1>, vector<12x1xf32>
    %51 = arith.mulf %50, %45 : vector<12x1xf32>
    %52 = vector.shape_cast %51 : vector<12x1xf32> to vector<1x12x1xf32>
    %cst_21 = arith.constant dense<0.000000e+00> : vector<1xf32>
    %53 = vector.multi_reduction <add>, %52, %cst_21 [1, 2] : vector<1x12x1xf32> to vector<1xf32>
    %54 = vector.shape_cast %53 : vector<1xf32> to vector<1x1x1xf32>
    %55 = vector.extract %54[0, 0, 0] : f32 from vector<1x1x1xf32>
    %cst_22 = arith.constant dense<0.000000e+00> : vector<12xf32>
    %56 = vector.multi_reduction <add>, %38, %cst_22 [1] : vector<12x2xf32> to vector<12xf32>
    %57 = vector.shape_cast %56 : vector<12xf32> to vector<12x1xf32>
    %cst_23 = arith.constant dense<0.000000e+00> : vector<12xf32>
    %58 = vector.multi_reduction <add>, %39, %cst_23 [1] : vector<12x2xf32> to vector<12xf32>
    %59 = vector.shape_cast %58 : vector<12xf32> to vector<12x1xf32>
    %cst_24 = arith.constant dense<0.000000e+00> : vector<12xf32>
    %60 = vector.multi_reduction <add>, %33, %cst_24 [1] : vector<12x2xf32> to vector<12xf32>
    %61 = vector.shape_cast %60 : vector<12xf32> to vector<12x1xf32>
    %cst_25 = arith.constant dense<0.000000e+00> : vector<12xf32>
    %62 = vector.multi_reduction <add>, %35, %cst_25 [1] : vector<12x2xf32> to vector<12xf32>
    %63 = vector.shape_cast %62 : vector<12xf32> to vector<12x1xf32>
    %cst_26 = arith.constant dense<0.000000e+00> : vector<12xf32>
    %64 = vector.multi_reduction <add>, %37, %cst_26 [1] : vector<12x2xf32> to vector<12xf32>
    %65 = vector.shape_cast %64 : vector<12xf32> to vector<12x1xf32>
    %66 = arith.mulf %57, %59 : vector<12x1xf32>
    %cst_27 = arith.constant 0.00666666683 : f32
    %67 = vector.broadcast %cst_27 : f32 to vector<12x1xf32>
    %68 = arith.mulf %66, %67 : vector<12x1xf32>
    %69 = arith.subf %65, %68 : vector<12x1xf32>
    %70 = arith.mulf %57, %57 : vector<12x1xf32>
    %cst_28 = arith.constant 0.00666666683 : f32
    %71 = vector.broadcast %cst_28 : f32 to vector<12x1xf32>
    %72 = arith.mulf %70, %71 : vector<12x1xf32>
    %73 = arith.subf %61, %72 : vector<12x1xf32>
    %cst_29 = arith.constant 0.000000e+00 : f32
    %74 = vector.broadcast %cst_29 : f32 to vector<12x1xf32>
    %75 = arith.maximumf %73, %74 : vector<12x1xf32>
    %76 = arith.mulf %59, %59 : vector<12x1xf32>
    %cst_30 = arith.constant 0.00666666683 : f32
    %77 = vector.broadcast %cst_30 : f32 to vector<12x1xf32>
    %78 = arith.mulf %76, %77 : vector<12x1xf32>
    %79 = arith.subf %63, %78 : vector<12x1xf32>
    %cst_31 = arith.constant 0.000000e+00 : f32
    %80 = vector.broadcast %cst_31 : f32 to vector<12x1xf32>
    %81 = arith.maximumf %79, %80 : vector<12x1xf32>
    %82 = arith.mulf %75, %81 : vector<12x1xf32>
    %83 = math.sqrt %82 : vector<12x1xf32>
    %cst_32 = arith.constant 9.99999993E-9 : f32
    %84 = vector.broadcast %cst_32 : f32 to vector<12x1xf32>
    %85 = arith.addf %83, %84 : vector<12x1xf32>
    %86 = tpu.reciprocal %85 {approx = true} : vector<12x1xf32> -> vector<12x1xf32>
    %87 = arith.mulf %69, %86 : vector<12x1xf32>
    %88 = arith.mulf %31, %87 : vector<12x1xf32>
    %89 = vector.shape_cast %88 : vector<12x1xf32> to vector<1x12x1xf32>
    %cst_33 = arith.constant dense<0.000000e+00> : vector<1xf32>
    %90 = vector.multi_reduction <add>, %89, %cst_33 [1, 2] : vector<1x12x1xf32> to vector<1xf32>
    %91 = vector.shape_cast %90 : vector<1xf32> to vector<1x1x1xf32>
    %92 = vector.extract %91[0, 0, 0] : f32 from vector<1x1x1xf32>
    %cst_34 = arith.constant 1.250000e-01 : f32
    %93 = arith.mulf %cst_34, %92 : f32
    %94 = arith.subf %55, %93 : f32
    %95 = arith.mulf %38, %38 : vector<12x2xf32>
    %cst_35 = arith.constant 0.0133333337 : f32
    %96 = vector.broadcast %cst_35 : f32 to vector<12x2xf32>
    %97 = arith.mulf %95, %96 : vector<12x2xf32>
    %98 = arith.subf %33, %97 : vector<12x2xf32>
    %cst_36 = arith.constant 0.000000e+00 : f32
    %99 = vector.broadcast %cst_36 : f32 to vector<12x2xf32>
    %100 = arith.maximumf %98, %99 : vector<12x2xf32>
    %101 = arith.mulf %39, %39 : vector<12x2xf32>
    %cst_37 = arith.constant 0.0133333337 : f32
    %102 = vector.broadcast %cst_37 : f32 to vector<12x2xf32>
    %103 = arith.mulf %101, %102 : vector<12x2xf32>
    %104 = arith.subf %35, %103 : vector<12x2xf32>
    %cst_38 = arith.constant 0.000000e+00 : f32
    %105 = vector.broadcast %cst_38 : f32 to vector<12x2xf32>
    %106 = arith.maximumf %104, %105 : vector<12x2xf32>
    %107 = arith.mulf %38, %39 : vector<12x2xf32>
    %cst_39 = arith.constant 0.0133333337 : f32
    %108 = vector.broadcast %cst_39 : f32 to vector<12x2xf32>
    %109 = arith.mulf %107, %108 : vector<12x2xf32>
    %110 = arith.subf %37, %109 : vector<12x2xf32>
    %cst_40 = arith.constant 0.0135135138 : f32
    %111 = vector.broadcast %cst_40 : f32 to vector<12x2xf32>
    %112 = arith.mulf %100, %111 : vector<12x2xf32>
    %113 = math.sqrt %112 : vector<12x2xf32>
    %cst_41 = arith.constant 9.99999997E-7 : f32
    %114 = vector.broadcast %cst_41 : f32 to vector<12x2xf32>
    %115 = arith.addf %113, %114 : vector<12x2xf32>
    %cst_42 = arith.constant 0.0135135138 : f32
    %116 = vector.broadcast %cst_42 : f32 to vector<12x2xf32>
    %117 = arith.mulf %106, %116 : vector<12x2xf32>
    %118 = math.sqrt %117 : vector<12x2xf32>
    %cst_43 = arith.constant 9.99999997E-7 : f32
    %119 = vector.broadcast %cst_43 : f32 to vector<12x2xf32>
    %120 = arith.addf %118, %119 : vector<12x2xf32>
    %121 = tpu.reciprocal %115 {approx = true} : vector<12x2xf32> -> vector<12x2xf32>
    %122 = tpu.reciprocal %120 {approx = true} : vector<12x2xf32> -> vector<12x2xf32>
    %123 = arith.mulf %121, %121 : vector<12x2xf32>
    %124 = arith.mulf %100, %123 : vector<12x2xf32>
    %125 = arith.mulf %122, %122 : vector<12x2xf32>
    %126 = arith.mulf %106, %125 : vector<12x2xf32>
    %127 = arith.addf %124, %126 : vector<12x2xf32>
    %cst_44 = arith.constant 2.000000e+00 : f32
    %128 = vector.broadcast %cst_44 : f32 to vector<12x2xf32>
    %129 = arith.mulf %128, %110 : vector<12x2xf32>
    %130 = arith.mulf %121, %122 : vector<12x2xf32>
    %131 = arith.mulf %129, %130 : vector<12x2xf32>
    %132 = arith.subf %127, %131 : vector<12x2xf32>
    %cst_45 = arith.constant dense<0.000000e+00> : vector<12xf32>
    %133 = vector.multi_reduction <add>, %132, %cst_45 [1] : vector<12x2xf32> to vector<12xf32>
    %134 = vector.shape_cast %133 : vector<12xf32> to vector<12x1xf32>
    %135 = arith.mulf %31, %134 : vector<12x1xf32>
    %136 = vector.shape_cast %135 : vector<12x1xf32> to vector<1x12x1xf32>
    %cst_46 = arith.constant dense<0.000000e+00> : vector<1xf32>
    %137 = vector.multi_reduction <add>, %136, %cst_46 [1, 2] : vector<1x12x1xf32> to vector<1xf32>
    %138 = vector.shape_cast %137 : vector<1xf32> to vector<1x1x1xf32>
    %139 = vector.extract %138[0, 0, 0] : f32 from vector<1x1x1xf32>
    %cst_47 = arith.constant 8.33333353E-4 : f32
    %140 = arith.mulf %cst_47, %139 : f32
    %141 = arith.addf %94, %140 : f32
    %142 = vector.broadcast %141 : f32 to vector<1x8x128xf32>
    %c0_48 = arith.constant 0 : index
    %c0_49 = arith.constant 0 : index
    %c0_50 = arith.constant 0 : index
    %143 = vector.load %arg4[%c0_48, %c0_49, %c0_50] : memref<1x8x128xf32, #tpu.memory_space<vmem>>, vector<1x8x128xf32>
    tpu.vector_store %arg4[%c0_48, %c0_49, %c0_50], %142 {strides = array<i32>} : memref<1x8x128xf32, #tpu.memory_space<vmem>>, vector<1x8x128xf32>,
    return
  }
  func.func @transform_0(%arg0: i32) -> (i32, i32) {
    %c0_i32 = arith.constant 0 : i32
    %c0_i32_0 = arith.constant 0 : i32
    return %arg0, %c0_i32 : i32, i32
  }
  func.func @transform_1(%arg0: i32) -> (i32, i32) {
    %c0_i32 = arith.constant 0 : i32
    %c0_i32_0 = arith.constant 0 : i32
    return %arg0, %c0_i32 : i32, i32
  }
  func.func @transform_2(%arg0: i32) -> (i32, i32) {
    %c0_i32 = arith.constant 0 : i32
    %c0_i32_0 = arith.constant 0 : i32
    %c0_i32_1 = arith.constant 0 : i32
    return %c0_i32, %c0_i32_0 : i32, i32
  }
  func.func @transform_3(%arg0: i32) -> (i32, i32, i32) {
    %c0_i32 = arith.constant 0 : i32
    %c0_i32_0 = arith.constant 0 : i32
    %c0_i32_1 = arith.constant 0 : i32
    return %arg0, %c0_i32, %c0_i32_0 : i32, i32, i32
  }
}

</mosaic_0001>

<bundles_post_ra>
// kernel: tpu_custom_call.1
= control target key start
LH: loop header
LB: loop body
LE: loop exit
PB: predicated region body
PF: predicated region fallthrough
CT: control target
= control target key end

     0   :  { %v868_v1 = vmov 0.0   ;;  %s1418_s0 = inlined_call_operand.vmem [shape: f32[12,150], index: 0, kind: input, shape index: {}]   ;;  %s1419_s1 = inlined_call_operand.vmem [shape: f32[12,150], index: 1, kind: input, shape index: {}]   ;;  %s1420_s2 = inlined_call_operand.vmem [shape: f32[150,2], index: 2, kind: input, shape index: {}]   ;;  %s1421_s3 = inlined_call_operand.hbm [shape: f32[1,8,128], index: 3, kind: output, shape index: {}]  }
   0x1   :  { %v895_v0 = vld [vmem:[%s1420_s2 + $0x78] sm:$0xff]  ;;  %106 = vmatprep.subr.mxu0 %v868_v1  ;;  %191 = vmatprep.subr.mxu1 %v868_v1  ;;  %v902_v2 = vld [vmem:[%s1420_s2 + $0x70] sm:$0xff]  ;;  %v911_v3 = vld [vmem:[%s1420_s2 + $0x68] sm:$0xff] }
   0x2   :  { %107 = vmatpush1.msra.mxu0 %v895_v0  ;;  %192 = vmatpush1.msra.mxu1 %v895_v0  ;;  %v920_v4 = vld [vmem:[%s1420_s2 + $0x60] sm:$0xff]  ;;  %v929_v5 = vld [vmem:[%s1420_s2 + $0x58] sm:$0xff]  ;;  %v938_v6 = vld [vmem:[%s1420_s2 + $0x50] sm:$0xff] }
   0x3   :  { %108 = vmatprep.subr.mxu0 %v868_v1  ;;  %193 = vmatprep.subr.mxu1 %v868_v1 }
   0x4   :  { %109 = vmatpush1.msra.mxu0 %v902_v2  ;;  %194 = vmatpush1.msra.mxu1 %v902_v2 }
   0x5   :  { %110 = vmatprep.subr.mxu0 %v868_v1  ;;  %195 = vmatprep.subr.mxu1 %v868_v1 }
   0x6   :  { %111 = vmatpush1.msra.mxu0 %v911_v3  ;;  %196 = vmatpush1.msra.mxu1 %v911_v3 }
   0x7   :  { %112 = vmatprep.subr.mxu0 %v868_v1  ;;  %197 = vmatprep.subr.mxu1 %v868_v1 }
   0x8   :  { %113 = vmatpush1.msra.mxu0 %v920_v4  ;;  %198 = vmatpush1.msra.mxu1 %v920_v4 }
   0x9   :  { %114 = vmatprep.subr.mxu0 %v868_v1  ;;  %199 = vmatprep.subr.mxu1 %v868_v1 }
   0xa   :  { %8 = vsyncpa [#allocation3], 0  ;;  %115 = vmatpush1.msra.mxu0 %v929_v5  ;;  %200 = vmatpush1.msra.mxu1 %v929_v5  ;;  %v947_v7 = vld [vmem:[%s1420_s2 + $0x48] sm:$0xff]  ;;  %v956_v8 = vld [vmem:[%s1420_s2 + $0x40] sm:$0xff]  ;;  %vm102_vm0 = vcmask 1045504   ;;  %vm95_vm1 = vcmask 179200  }
   0xb   :  { %116 = vmatprep.subr.mxu0 %v868_v1  ;;  %201 = vmatprep.subr.mxu1 %v868_v1  ;;  %v965_v9 = vld [vmem:[%s1420_s2 + $0x38] sm:$0xff]  ;;  %v974_v10 = vld [vmem:[%s1420_s2 + $0x30] sm:$0xff]  ;;  %v983_v11 = vld [vmem:[%s1420_s2 + $0x28] sm:$0xff]  ;;  %vm519_vm2 = vcmask 15360   ;;  %vm523_vm3 = vcmask 11264   ;;  %s871_s13 = smov [#allocation2]  }
   0xc   :  { %117 = vmatpush1.msra.mxu0 %v938_v6  ;;  %202 = vmatpush1.msra.mxu1 %v938_v6  ;;  %v992_v12 = vld [vmem:[%s1420_s2 + $0x20] sm:$0xff]  ;;  %v1001_v13 = vld [vmem:[%s1420_s2 + $0x18] sm:$0xff]  ;;  %v1010_v14 = vld [vmem:[%s1420_s2 + $0x10] sm:$0xff]  ;;  %s747_s14 = sshll.u32 %s871_s13, 4  ;;  %s748_s14 = int_to_ptr.vmem [resolvable:$true] %s747_s14 }
   0xd   :  { %118 = vmatprep.subr.mxu0 %v868_v1  ;;  %203 = vmatprep.subr.mxu1 %v868_v1  ;;  %v1019_v15 = vld [vmem:[%s1420_s2 + $0x8] sm:$0xff]  ;;  %v1028_v16 = vld [vmem:[%s1420_s2] sm:$0xff]  ;;  %v1037_v17 = vld [vmem:[%s1420_s2 + $0x90] sm:$0x3f]  ;;  %s846_s18 = scalar_lea.vmem %s748_s14, 128  ;;  %p851_p1 = scmp.lt.s32.totalorder %s748_s14, %s748_s14 }
   0xe   :  { %119 = vmatpush1.msra.mxu0 %v947_v7  ;;  %204 = vmatpush1.msra.mxu1 %v947_v7  ;;  %v1042_v18 = vld [vmem:[%s1418_s0 + $0x8] sm:$0xff]  ;;  %v1061_v21 = vld [vmem:[%s1418_s0] sm:$0xff]  ;;  %v18_v28 = vld [vmem:[%s1418_s0 + $0x18] sm:$0xf]  ;;  %p847_p0 = scmp.ne.s32.totalorder %s748_s14, %s846_s18  ;;  %p852_p2 = scmp.lt.s32.totalorder %s846_s18, %s846_s18 }
   0xf   :  { %120 = vmatprep.subr.mxu0 %v868_v1  ;;  %205 = vmatprep.subr.mxu1 %v868_v1  ;;  %v1049_v19 = vld [vmem:[%s1419_s1 + $0x8] sm:$0xff]  ;;  %v1066_v22 = vld [vmem:[%s1419_s1] sm:$0xff]  ;;  %v92_v23 = vmul.f32 %v1042_v18, %v1042_v18  ;;  %v91_v26 = vmul.f32 %v1061_v21, %v1061_v21  ;;  %v1153_v29 = vld [vmem:[%s1419_s1 + $0x18] sm:$0xf]  ;;  %v94_v32 = vmul.f32 %v18_v28, %v18_v28 }
  0x10   :  { %121 = vmatpush1.msra.mxu0 %v956_v8  ;;  %206 = vmatpush1.msra.mxu1 %v956_v8  ;;  %v1056_v20 = vld [vmem:[%s1420_s2 + $0x88] sm:$0xff]  ;;  %v1079_v24 = vld [vmem:[%s1420_s2 + $0x80] sm:$0xff]  ;;  %v182_v25 = vmul.f32 %v1049_v19, %v1049_v19  ;;  %v181_v27 = vmul.f32 %v1066_v22, %v1066_v22  ;;  %v17_v30 = vld [vmem:[%s1418_s0 + $0x10] sm:$0xf]  ;;  %v184_v33 = vmul.f32 %v1153_v29, %v1153_v29  ;;  %p853_p3 = por %p852_p2, %p851_p1 }
  0x11   :  { %122 = vmatprep.subr.mxu0 %v868_v1  ;;  %207 = vmatprep.subr.mxu1 %v868_v1  ;;  %v1165_v31 = vld [vmem:[%s1419_s1 + $0x10] sm:$0xf]  ;;  %v93_v34 = vmul.f32 %v17_v30, %v17_v30  ;;  %v267_v36 = vmul.f32 %v1049_v19, %v1042_v18  ;;  %v266_v37 = vmul.f32 %v1066_v22, %v1061_v21 }
  0x12   :  { %123 = vmatpush1.msra.mxu0 %v965_v9  ;;  %208 = vmatpush1.msra.mxu1 %v965_v9  ;;  %v183_v35 = vmul.f32 %v1165_v31, %v1165_v31  ;;  %v269_v38 = vmul.f32 %v1153_v29, %v18_v28  ;;  %v268_v39 = vmul.f32 %v1165_v31, %v17_v30  ;;  %p854_p4 = pnand %p853_p3, %p847_p0 }
  0x13   :  { %124 = vmatprep.subr.mxu0 %v868_v1  ;;  %209 = vmatprep.subr.mxu1 %v868_v1 }
  0x14   :  { %125 = vmatpush1.msra.mxu0 %v974_v10  ;;  %210 = vmatpush1.msra.mxu1 %v974_v10 }
  0x15   :  { %126 = vmatprep.subr.mxu0 %v868_v1  ;;  %211 = vmatprep.subr.mxu1 %v868_v1 }
  0x16   :  { %127 = vmatpush1.msra.mxu0 %v983_v11  ;;  %212 = vmatpush1.msra.mxu1 %v983_v11 }
  0x17   :  { %128 = vmatprep.subr.mxu0 %v868_v1  ;;  %213 = vmatprep.subr.mxu1 %v868_v1 }
  0x18   :  { %129 = vmatpush1.msra.mxu0 %v992_v12  ;;  %214 = vmatpush1.msra.mxu1 %v992_v12 }
  0x19   :  { %130 = vmatprep.subr.mxu0 %v868_v1  ;;  %215 = vmatprep.subr.mxu1 %v868_v1 }
  0x1a   :  { %131 = vmatpush1.msra.mxu0 %v1001_v13  ;;  %216 = vmatpush1.msra.mxu1 %v1001_v13 }
  0x1b   :  { %132 = vmatprep.subr.mxu0 %v868_v1  ;;  %217 = vmatprep.subr.mxu1 %v868_v1 }
  0x1c   :  { %133 = vmatpush1.msra.mxu0 %v1010_v14  ;;  %218 = vmatpush1.msra.mxu1 %v1010_v14 }
  0x1d   :  { %134 = vmatprep.subr.mxu0 %v868_v1  ;;  %219 = vmatprep.subr.mxu1 %v868_v1 }
  0x1e   :  { %135 = vmatpush1.msra.mxu0 %v1019_v15  ;;  %220 = vmatpush1.msra.mxu1 %v1019_v15 }
  0x1f   :  { %136 = vmatprep.subr.mxu0 %v868_v1  ;;  %221 = vmatprep.subr.mxu1 %v868_v1 }
  0x20   :  { %137 = vmatpush1.msra.mxu0 %v1028_v16  ;;  %222 = vmatpush1.msra.mxu1 %v1028_v16 }
  0x21   :  { %164 = vmatprep.subr.mxu0 %v868_v1  ;;  %249 = vmatprep.subr.mxu1 %v868_v1 }
  0x22   :  { %755 = vmatpush2.msk.msra.mxu0 %vm102_vm0, %v1037_v17  ;;  %758 = vmatpush2.msk.msra.mxu1 %vm102_vm0, %v1037_v17 }
  0x23   :  { %166 = vmatprep.subr.mxu0 %v868_v1  ;;  %251 = vmatprep.subr.mxu1 %v868_v1 }
  0x24   :  { %167 = vmatpush2.msra.mxu0 %v1056_v20  ;;  %252 = vmatpush2.msra.mxu1 %v1056_v20 }
  0x25   :  { %168 = vmatprep.subr.mxu0 %v868_v1  ;;  %253 = vmatprep.subr.mxu1 %v868_v1 }
  0x26   :  { %169 = vmatpush2.msra.mxu0 %v1079_v24  ;;  %756 = vmatprep.mubr.msk.f32.mxu0 %vm95_vm1, %v92_v23 }
  0x27   :  { %254 = vmatpush2.msra.mxu1 %v1079_v24  ;;  %759 = vmatprep.mubr.msk.f32.mxu1 %vm95_vm1, %v182_v25 }
  0x28   :  { %171 = vmatmul.mubr.f32.vlgmr.msra.gmra.mxu0 %v91_v26  ;;  %256 = vmatmul.mubr.f32.vlgmr.msra.gmra.mxu1 %v181_v27 }
  0x29   :  { %276 = vmatprep.subr.mxu0 %v868_v1  ;;  %357 = vmatprep.subr.mxu1 %v868_v1 }
  0x2a   :  { %277 = vmatpush1.msra.mxu0 %v895_v0  ;;  %358 = vmatpush1.msra.mxu1 %v895_v0 }
  0x2b   :  { %278 = vmatprep.subr.mxu0 %v868_v1  ;;  %359 = vmatprep.subr.mxu1 %v868_v1 }
  0x2c   :  { %279 = vmatpush1.msra.mxu0 %v902_v2  ;;  %360 = vmatpush1.msra.mxu1 %v902_v2 }
  0x2d   :  { %280 = vmatprep.subr.mxu0 %v868_v1  ;;  %361 = vmatprep.subr.mxu1 %v868_v1 }
  0x2e   :  { %281 = vmatpush1.msra.mxu0 %v911_v3  ;;  %362 = vmatpush1.msra.mxu1 %v911_v3 }
  0x2f   :  { %282 = vmatprep.subr.mxu0 %v868_v1  ;;  %363 = vmatprep.subr.mxu1 %v868_v1 }
  0x30   :  { %283 = vmatpush1.msra.mxu0 %v920_v4  ;;  %364 = vmatpush1.msra.mxu1 %v920_v4 }
  0x31   :  { %284 = vmatprep.subr.mxu0 %v868_v1  ;;  %365 = vmatprep.subr.mxu1 %v868_v1 }
  0x32   :  { %285 = vmatpush1.msra.mxu0 %v929_v5  ;;  %366 = vmatpush1.msra.mxu1 %v929_v5 }
  0x33   :  { %286 = vmatprep.subr.mxu0 %v868_v1  ;;  %367 = vmatprep.subr.mxu1 %v868_v1 }
  0x34   :  { %287 = vmatpush1.msra.mxu0 %v938_v6  ;;  %368 = vmatpush1.msra.mxu1 %v938_v6 }
  0x35   :  { %288 = vmatprep.subr.mxu0 %v868_v1  ;;  %369 = vmatprep.subr.mxu1 %v868_v1 }
  0x36   :  { %289 = vmatpush1.msra.mxu0 %v947_v7  ;;  %370 = vmatpush1.msra.mxu1 %v947_v7 }
  0x37   :  { %290 = vmatprep.subr.mxu0 %v868_v1  ;;  %371 = vmatprep.subr.mxu1 %v868_v1 }
  0x38   :  { %291 = vmatpush1.msra.mxu0 %v956_v8  ;;  %372 = vmatpush1.msra.mxu1 %v956_v8 }
  0x39   :  { %292 = vmatprep.subr.mxu0 %v868_v1  ;;  %373 = vmatprep.subr.mxu1 %v868_v1 }
  0x3a   :  { %293 = vmatpush1.msra.mxu0 %v965_v9  ;;  %374 = vmatpush1.msra.mxu1 %v965_v9 }
  0x3b   :  { %294 = vmatprep.subr.mxu0 %v868_v1  ;;  %375 = vmatprep.subr.mxu1 %v868_v1 }
  0x3c   :  { %295 = vmatpush1.msra.mxu0 %v974_v10  ;;  %376 = vmatpush1.msra.mxu1 %v974_v10 }
  0x3d   :  { %296 = vmatprep.subr.mxu0 %v868_v1  ;;  %377 = vmatprep.subr.mxu1 %v868_v1 }
  0x3e   :  { %297 = vmatpush1.msra.mxu0 %v983_v11  ;;  %378 = vmatpush1.msra.mxu1 %v983_v11 }
  0x3f   :  { %298 = vmatprep.subr.mxu0 %v868_v1  ;;  %379 = vmatprep.subr.mxu1 %v868_v1 }
  0x40   :  { %299 = vmatpush1.msra.mxu0 %v992_v12  ;;  %380 = vmatpush1.msra.mxu1 %v992_v12 }
  0x41   :  { %300 = vmatprep.subr.mxu0 %v868_v1  ;;  %381 = vmatprep.subr.mxu1 %v868_v1 }
  0x42   :  { %301 = vmatpush1.msra.mxu0 %v1001_v13  ;;  %382 = vmatpush1.msra.mxu1 %v1001_v13 }
  0x43   :  { %302 = vmatprep.subr.mxu0 %v868_v1  ;;  %383 = vmatprep.subr.mxu1 %v868_v1 }
  0x44   :  { %303 = vmatpush1.msra.mxu0 %v1010_v14  ;;  %384 = vmatpush1.msra.mxu1 %v1010_v14 }
  0x45   :  { %304 = vmatprep.subr.mxu0 %v868_v1  ;;  %385 = vmatprep.subr.mxu1 %v868_v1 }
  0x46   :  { %305 = vmatpush1.msra.mxu0 %v1019_v15  ;;  %386 = vmatpush1.msra.mxu1 %v1019_v15 }
  0x47   :  { %306 = vmatprep.subr.mxu0 %v868_v1  ;;  %387 = vmatprep.subr.mxu1 %v868_v1 }
  0x48   :  { %307 = vmatpush1.msra.mxu0 %v1028_v16  ;;  %388 = vmatpush1.msra.mxu1 %v1028_v16 }
  0x49   :  { %757 = vmatprep.mubr.msk.f32.mxu0 %vm95_vm1, %v94_v32  ;;  %760 = vmatprep.mubr.msk.f32.mxu1 %vm95_vm1, %v184_v33 }
  0x4a   :  { %334 = vmatprep.subr.mxu0 %v868_v1  ;;  %415 = vmatprep.subr.mxu1 %v868_v1 }
  0x4b   :  { %176 = vmatmul.mubr.f32.gmra.mxu0 %v93_v34  ;;  %261 = vmatmul.mubr.f32.gmra.mxu1 %v183_v35 }
  0x4c   :  { %761 = vmatpush2.msk.msra.mxu0 %vm102_vm0, %v1037_v17  ;;  %764 = vmatpush2.msk.msra.mxu1 %vm102_vm0, %v1037_v17 }
  0x4d   :  { %336 = vmatprep.subr.mxu0 %v868_v1  ;;  %417 = vmatprep.subr.mxu1 %v868_v1 }
  0x4e   :  { %337 = vmatpush2.msra.mxu0 %v1056_v20  ;;  %418 = vmatpush2.msra.mxu1 %v1056_v20 }
  0x4f   :  { %338 = vmatprep.subr.mxu0 %v868_v1  ;;  %419 = vmatprep.subr.mxu1 %v868_v1 }
  0x50   :  { %339 = vmatpush2.msra.mxu0 %v1079_v24  ;;  %762 = vmatprep.mubr.msk.f32.mxu0 %vm95_vm1, %v267_v36 }
  0x51   :  { %420 = vmatpush2.msra.mxu1 %v1079_v24  ;;  %765 = vmatprep.mubr.msk.f32.mxu1 %vm95_vm1, %v1042_v18 }
  0x52   :  { %341 = vmatmul.mubr.f32.vlgmr.msra.gmra.mxu0 %v266_v37  ;;  %422 = vmatmul.mubr.f32.vlgmr.msra.gmra.mxu1 %v1061_v21 }
  0x53   :  { %438 = vmatprep.subr.mxu0 %v868_v1  ;;  %770 = vmatprep.subr.mxu1 %v868_v1 }
  0x54   :  { %439 = vmatpush1.msra.mxu0 %v895_v0  ;;  %789 = vmatpush1.msra.mxu1 %v895_v0 }
  0x55   :  { %440 = vmatprep.subr.mxu0 %v868_v1  ;;  %771 = vmatprep.subr.mxu1 %v868_v1 }
  0x56   :  { %763 = vmatprep.mubr.msk.f32.mxu0 %vm95_vm1, %v269_v38  ;;  %766 = vmatprep.mubr.msk.f32.mxu1 %vm95_vm1, %v18_v28 }
  0x57   :  { %441 = vmatpush1.msra.mxu0 %v902_v2  ;;  %790 = vmatpush1.msra.mxu1 %v902_v2 }
  0x58   :  { %346 = vmatmul.mubr.f32.gmra.mxu0 %v268_v39  ;;  %427 = vmatmul.mubr.f32.gmra.mxu1 %v17_v30 }
  0x59   :  { %442 = vmatprep.subr.mxu0 %v868_v1  ;;  %772 = vmatprep.subr.mxu1 %v868_v1 }
  0x5a   :  { %443 = vmatpush1.msra.mxu0 %v911_v3  ;;  %791 = vmatpush1.msra.mxu1 %v911_v3 }
  0x5b   :  { %444 = vmatprep.subr.mxu0 %v868_v1  ;;  %773 = vmatprep.subr.mxu1 %v868_v1 }
  0x5c   :  { %445 = vmatpush1.msra.mxu0 %v920_v4  ;;  %792 = vmatpush1.msra.mxu1 %v920_v4 }
  0x5d   :  { %446 = vmatprep.subr.mxu0 %v868_v1  ;;  %774 = vmatprep.subr.mxu1 %v868_v1 }
  0x5e   :  { %447 = vmatpush1.msra.mxu0 %v929_v5  ;;  %793 = vmatpush1.msra.mxu1 %v929_v5 }
  0x5f   :  { %448 = vmatprep.subr.mxu0 %v868_v1  ;;  %775 = vmatprep.subr.mxu1 %v868_v1 }
  0x60   :  { %449 = vmatpush1.msra.mxu0 %v938_v6  ;;  %794 = vmatpush1.msra.mxu1 %v938_v6 }
  0x61   :  { %450 = vmatprep.subr.mxu0 %v868_v1  ;;  %776 = vmatprep.subr.mxu1 %v868_v1 }
  0x62   :  { %451 = vmatpush1.msra.mxu0 %v947_v7  ;;  %795 = vmatpush1.msra.mxu1 %v947_v7 }
  0x63   :  { %452 = vmatprep.subr.mxu0 %v868_v1  ;;  %777 = vmatprep.subr.mxu1 %v868_v1 }
  0x64   :  { %453 = vmatpush1.msra.mxu0 %v956_v8  ;;  %796 = vmatpush1.msra.mxu1 %v956_v8 }
  0x65   :  { %454 = vmatprep.subr.mxu0 %v868_v1  ;;  %778 = vmatprep.subr.mxu1 %v868_v1 }
  0x66   :  { %455 = vmatpush1.msra.mxu0 %v965_v9  ;;  %797 = vmatpush1.msra.mxu1 %v965_v9 }
  0x67   :  { %456 = vmatprep.subr.mxu0 %v868_v1  ;;  %779 = vmatprep.subr.mxu1 %v868_v1 }
  0x68   :  { %457 = vmatpush1.msra.mxu0 %v974_v10  ;;  %798 = vmatpush1.msra.mxu1 %v974_v10 }
  0x69   :  { %458 = vmatprep.subr.mxu0 %v868_v1  ;;  %780 = vmatprep.subr.mxu1 %v868_v1 }
  0x6a   :  { %459 = vmatpush1.msra.mxu0 %v983_v11  ;;  %799 = vmatpush1.msra.mxu1 %v983_v11 }
  0x6b   :  { %460 = vmatprep.subr.mxu0 %v868_v1  ;;  %781 = vmatprep.subr.mxu1 %v868_v1 }
  0x6c   :  { %461 = vmatpush1.msra.mxu0 %v992_v12  ;;  %800 = vmatpush1.msra.mxu1 %v992_v12 }
  0x6d   :  { %462 = vmatprep.subr.mxu0 %v868_v1  ;;  %782 = vmatprep.subr.mxu1 %v868_v1 }
  0x6e   :  { %463 = vmatpush1.msra.mxu0 %v1001_v13  ;;  %801 = vmatpush1.msra.mxu1 %v1001_v13 }
  0x6f   :  { %464 = vmatprep.subr.mxu0 %v868_v1  ;;  %783 = vmatprep.subr.mxu1 %v868_v1 }
  0x70   :  { %465 = vmatpush1.msra.mxu0 %v1010_v14  ;;  %802 = vmatpush1.msra.mxu1 %v1010_v14 }
  0x71   :  { %466 = vmatprep.subr.mxu0 %v868_v1  ;;  %784 = vmatprep.subr.mxu1 %v868_v1 }
  0x72   :  { %467 = vmatpush1.msra.mxu0 %v1019_v15  ;;  %803 = vmatpush1.msra.mxu1 %v1019_v15 }
  0x73   :  { %468 = vmatprep.subr.mxu0 %v868_v1  ;;  %785 = vmatprep.subr.mxu1 %v868_v1 }
  0x74   :  { %469 = vmatpush1.msra.mxu0 %v1028_v16  ;;  %804 = vmatpush1.msra.mxu1 %v1028_v16 }
  0x75   :  { %496 = vmatprep.subr.mxu0 %v868_v1  ;;  %786 = vmatprep.subr.mxu1 %v868_v1 }
  0x76   :  { %767 = vmatpush2.msk.msra.mxu0 %vm102_vm0, %v1037_v17  ;;  %805 = vmatpush2.msk.msra.mxu1 %vm102_vm0, %v1037_v17 }
  0x77   :  { %498 = vmatprep.subr.mxu0 %v868_v1  ;;  %787 = vmatprep.subr.mxu1 %v868_v1 }
  0x78   :  { %499 = vmatpush2.msra.mxu0 %v1056_v20  ;;  %806 = vmatpush2.msra.mxu1 %v1056_v20 }
  0x79   :  { %500 = vmatprep.subr.mxu0 %v868_v1  ;;  %788 = vmatprep.subr.mxu1 %v868_v1 }
  0x7a   :  { %501 = vmatpush2.msra.mxu0 %v1079_v24  ;;  %807 = vmatpush2.msra.mxu1 %v1079_v24 }
  0x7b   :  { %768 = vmatprep.mubr.msk.f32.mxu0 %vm95_vm1, %v1049_v19  ;;  %769 = vmatprep.mubr.msk.f32.mxu1 %vm95_vm1, %v1153_v29 }
  0x7c   :  { %503 = vmatmul.mubr.f32.vlgmr.msra.gmra.mxu0 %v1066_v22  ;;  %508 = vmatmul.mubr.f32.vlgmr.msra.gmra.mxu1 %v1165_v31 }
  0xe8   :  { %v172_v40 = vpop.f32.mrf.mxu0  ;;  %v1291_v41 = vpop.f32.mrf.mxu1 }
  0xe9   :  { %v559_v42 = vsel %vm519_vm2, %v172_v40, 0.0  ;;  %v565_v61 = vsel %vm519_vm2, %v1291_v41, 0.0 }
  0xea   :  { %v174_v43 = vpop.f32.mrf.mxu0  ;;  %v259_v44 = vpop.f32.mrf.mxu1  ;;  %560 = vadd.xlane.f32.xlu0 %v559_v42 }
 0x10b   :  { %v1294_v45 = vpop.f32.mrf.mxu0  ;;  %v1296_v46 = vpop.f32.mrf.mxu1 }
 0x10c   :  { %v562_v47 = vsel %vm523_vm3, %v1294_v45, 0.0  ;;  %v568_v37 = vsel %vm523_vm3, %v1296_v46, 0.0 }
 0x10d   :  { %v179_v48 = vpop.f32.mrf.mxu0  ;;  %v264_v49 = vpop.f32.mrf.mxu1  ;;  %563 = vadd.xlane.f32.xlu1 %v562_v47 }
 0x112   :  { %v1300_v50 = vpop.f32.mrf.mxu0  ;;  %v423_v51 = vpop.f32.mrf.mxu1 }
 0x113   :  { %v547_v52 = vsel %vm519_vm2, %v423_v51, 0.0  ;;  %v513_v57 = vmul.f32 2.0, %v1300_v50  ;;  %v571_v63 = vsel %vm519_vm2, %v1300_v50, 0.0  ;;  %v637_v2 = vmul.f32 %v423_v51, %v423_v51 }
 0x114   :  { %v425_v53 = vpop.f32.mrf.mxu1  ;;  %548 = vadd.xlane.f32.xlu0 %v547_v52  ;;  %v344_v54 = vpop.f32.mrf.mxu0 }
 0x115   :  { %v515_v62 = vsub.f32 %v172_v40, %v513_v57  ;;  %v639_v5 = vmul.f32 0.013333334, %v637_v2 }
 0x117   :  { %v517_v0 = vadd.f32 %v515_v62, %v1291_v41  ;;  %v641_v7 = vsub.f32 %v172_v40, %v639_v5 }
 0x118   :  { %v1303_v55 = vpop.f32.mrf.mxu0  ;;  %v428_v56 = vpop.f32.mrf.mxu1 }
 0x119   :  { %v550_v58 = vsel %vm523_vm3, %v428_v56, 0.0  ;;  %v520_v3 = vsel %vm519_vm2, %v517_v0, 0.0  ;;  %v638_v4 = vmul.f32 %v428_v56, %v428_v56  ;;  %v1314_v9 = vmax.f32 %v641_v7, 0.0 }
 0x11a   :  { %551 = vadd.xlane.f32.xlu0 %v550_v58  ;;  %v349_v59 = vpop.f32.mrf.mxu0  ;;  %v430_v60 = vpop.f32.mrf.mxu1  ;;  %v514_v29 = vmul.f32 2.0, %v1303_v55  ;;  %v574_v42 = vsel %vm523_vm3, %v1303_v55, 0.0 }
 0x11b   :  { %v640_v6 = vmul.f32 0.013333334, %v638_v4  ;;  %v659_v11 = vmul.f32 0.013513514, %v1314_v9 }
 0x11c   :  { %v516_v38 = vsub.f32 %v1294_v45, %v514_v29  ;;  %v43_v29 = vlaneseq }
 0x11d   :  { %v642_v8 = vsub.f32 %v1294_v45, %v640_v6  ;;  %822 = vrsqrt.f32 %v659_v11  ;;  %vm663_vm4 = vcmp.eq.f32.partialorder %v659_v11, inf  ;;  %v666_v47 = vand.u32 2147483648, %v659_v11 }
 0x11e   :  { %566 = vadd.xlane.f32.xlu0 %v565_v61  ;;  %v518_v43 = vadd.f32 %v516_v38, %v1296_v46  ;;  %vm665_vm6 = vcmp.eq.f32.partialorder %v659_v11, 0.0 }
 0x11f   :  { %v1316_v10 = vmax.f32 %v642_v8, 0.0 }
 0x120   :  { %v524_v48 = vsel %vm523_vm3, %v518_v43, 0.0 }
 0x121   :  { %v660_v12 = vmul.f32 0.013513514, %v1316_v10 }
 0x122   :  { %572 = vadd.xlane.f32.xlu0 %v571_v63 }
 0x123   :  { %824 = vrsqrt.f32 %v660_v12  ;;  %vm670_vm5 = vcmp.eq.f32.partialorder %v660_v12, inf  ;;  %vm672_vm7 = vcmp.eq.f32.partialorder %v660_v12, 0.0 }
 0x126   :  { %521 = vadd.xlane.f32.xlu0 %v520_v3 }
 0x12a   :  { %v823_v34 = vpop.eup %822 }
 0x12b   :  { %v662_v40 = vmul.f32 %v823_v34, %v659_v11 }
 0x12d   :  { %v664_v44 = vsel %vm663_vm4, %v659_v11, %v662_v40 }
 0x12e   :  { %v667_v49 = vsel %vm665_vm6, %v666_v47, %v664_v44  ;;  %vm535_vm6 = vcmask 3072  }
 0x12f   :  { %v675_v53 = vadd.f32 1e-06, %v667_v49 }
 0x130   :  { %v825_v39 = vpop.eup %824 }
 0x13c   :  { %v504_v13 = vpop.f32.mrf.mxu0  ;;  %v509_v14 = vpop.f32.mrf.mxu1 }
 0x13d   :  { %v645_v15 = vmul.f32 %v504_v13, %v504_v13  ;;  %v653_v16 = vmul.f32 %v504_v13, %v423_v51  ;;  %v646_v17 = vmul.f32 %v509_v14, %v509_v14  ;;  %v654_v18 = vmul.f32 %v509_v14, %v428_v56 }
 0x13e   :  { %v511_v19 = vpop.f32.mrf.mxu1  ;;  %v553_v20 = vsel %vm519_vm2, %v504_v13, 0.0  ;;  %v506_v21 = vpop.f32.mrf.mxu0  ;;  %v556_v31 = vsel %vm523_vm3, %v509_v14, 0.0  ;;  %v673_v51 = vand.u32 2147483648, %v660_v12 }
 0x13f   :  { %v647_v22 = vmul.f32 0.013333334, %v645_v15  ;;  %v1321_v23 = vmul.f32 0.013333334, %v653_v16  ;;  %v648_v24 = vmul.f32 0.013333334, %v646_v17  ;;  %554 = vadd.xlane.f32.xlu1 %v553_v20 }
 0x140   :  { %v1323_v25 = vmul.f32 0.013333334, %v654_v18 }
 0x141   :  { %v649_v26 = vsub.f32 %v1291_v41, %v647_v22  ;;  %v657_v27 = vsub.f32 %v1300_v50, %v1321_v23  ;;  %v650_v28 = vsub.f32 %v1296_v46, %v648_v24  ;;  %v669_v41 = vmul.f32 %v825_v39, %v660_v12 }
 0x142   :  { %v658_v30 = vsub.f32 %v1303_v55, %v1323_v25 }
 0x143   :  { %v1333_v32 = vmax.f32 %v649_v26, 0.0  ;;  %v1335_v33 = vmax.f32 %v650_v28, 0.0  ;;  %557 = vadd.xlane.f32.xlu1 %v556_v31  ;;  %v671_v45 = vsel %vm670_vm5, %v660_v12, %v669_v41  ;;  %v709_v13 = vmul.f32 2.0, %v657_v27 }
 0x144   :  { %v674_v52 = vsel %vm672_vm7, %v673_v51, %v671_v45  ;;  %v710_v22 = vmul.f32 2.0, %v658_v30  ;;  %v44_v31 = vshrl.u32 %v43_v29, 7  ;;  %vm533_vm5 = vcmask 7168  }
 0x145   :  { %v677_v35 = vmul.f32 0.013513514, %v1333_v32  ;;  %v678_v36 = vmul.f32 0.013513514, %v1335_v33  ;;  %v676_v56 = vadd.f32 1e-06, %v674_v52 }
 0x146   :  { %v1364_v55 = vmul.u32.u64.low 2863311531, %v44_v31  ;;  %v1365_v25 = vmul.u32.u64.high 2863311531, %v44_v31, %v1364_v55 }
 0x147   :  { %826 = vrsqrt.f32 %v677_v35  ;;  %569 = vadd.xlane.f32.xlu1 %v568_v37  ;;  %vm681_vm8 = vcmp.eq.f32.partialorder %v677_v35, inf  ;;  %v684_v59 = vand.u32 2147483648, %v677_v35  ;;  %vm683_vm9 = vcmp.eq.f32.partialorder %v677_v35, 0.0 }
 0x148   :  { %828 = vrsqrt.f32 %v678_v36  ;;  %vm688_vm10 = vcmp.eq.f32.partialorder %v678_v36, inf  ;;  %v691_v61 = vand.u32 2147483648, %v678_v36  ;;  %vm690_vm11 = vcmp.eq.f32.partialorder %v678_v36, 0.0 }
 0x149   :  { %830 = vrcp.f32 %v675_v53 }
 0x14a   :  { %832 = vrcp.f32 %v676_v56 }
 0x14b   :  { %575 = vadd.xlane.f32.xlu1 %v574_v42 }
 0x14f   :  { %525 = vadd.xlane.f32.xlu1 %v524_v48 }
 0x154   :  { %v827_v54 = vpop.eup %826 }
 0x155   :  { %v829_v57 = vpop.eup %828  ;;  %v680_v58 = vmul.f32 %v827_v54, %v677_v35 }
 0x156   :  { %v687_v46 = vmul.f32 %v829_v57, %v678_v36  ;;  %v831_v4 = vpop.eup %830 }
 0x157   :  { %v682_v60 = vsel %vm681_vm8, %v677_v35, %v680_v58  ;;  %v833_v5 = vpop.eup %832  ;;  %v699_v6 = vmul.f32 %v831_v4, %v831_v4 }
 0x158   :  { %v685_v62 = vsel %vm683_vm9, %v684_v59, %v682_v60  ;;  %v689_v63 = vsel %vm688_vm10, %v678_v36, %v687_v46  ;;  %v700_v8 = vmul.f32 %v833_v5, %v833_v5  ;;  %v57_v36 = vshrl.u32 %v1365_v25, 2 }
 0x159   :  { %v693_v0 = vadd.f32 1e-06, %v685_v62  ;;  %v692_v2 = vsel %vm690_vm11, %v691_v61, %v689_v63  ;;  %v701_v17 = vmul.f32 %v699_v6, %v1314_v9  ;;  %vm870_vm11 = vmmov 1  }
 0x15a   :  { %v694_v3 = vadd.f32 1e-06, %v692_v2  ;;  %v702_v20 = vmul.f32 %v700_v8, %v1316_v10  ;;  %v1358_v10 = vadd.s32 8, %v44_v31  ;;  %v58_v38 = vmul.u32 6, %v57_v36 }
 0x15b   :  { %834 = vrcp.f32 %v693_v0 }
 0x15c   :  { %836 = vrcp.f32 %v694_v3  ;;  %v59_v43 = vsub.s32 %v44_v31, %v58_v38  ;;  %vm50_vm4 = vcmp.lt.s32.totalorder %v1358_v10, 12 }
 0x15e   :  { %vm73_vm14 = vcmp.ne.s32.totalorder %v59_v43, 0  ;;  %vm75_vm15 = vcmp.lt.s32.totalorder %v59_v43, 0  ;;  %v79_v52 = vadd.s32 6, %v59_v43 }
 0x15f   :  { %vm77_vm1 = vmand %vm75_vm15, %vm73_vm14 }
 0x160   :  { %v81_v62 = vsel %vm77_vm1, %v79_v52, %v59_v43 }
 0x168   :  { %v835_v7 = vpop.eup %834 }
 0x169   :  { %v837_v11 = vpop.eup %836  ;;  %v703_v12 = vmul.f32 %v835_v7, %v835_v7  ;;  %v711_v14 = vmul.f32 %v835_v7, %v831_v4 }
 0x16a   :  { %v704_v15 = vmul.f32 %v837_v11, %v837_v11  ;;  %v712_v16 = vmul.f32 %v837_v11, %v833_v5 }
 0x16b   :  { %v705_v18 = vmul.f32 %v703_v12, %v1333_v32  ;;  %v713_v19 = vmul.f32 %v711_v14, %v709_v13  ;;  %v869_v13 = vmov 0.00083333335  }
 0x16c   :  { %v706_v21 = vmul.f32 %v704_v15, %v1335_v33  ;;  %v714_v50 = vmul.f32 %v712_v16, %v710_v22  ;;  %v1361_v32 = vmul.u32.u64.low 2863311531, %v1358_v10  ;;  %v1362_v33 = vmul.u32.u64.high 2863311531, %v1358_v10, %v1361_v32 }
 0x16d   :  { %v707_v24 = vadd.f32 %v705_v18, %v701_v17 }
 0x16e   :  { %v708_v26 = vadd.f32 %v706_v21, %v702_v20  ;;  %v68_v34 = vshrl.u32 %v1362_v33, 2 }
 0x16f   :  { %v715_v23 = vsub.f32 %v707_v24, %v713_v19 }
 0x170   :  { %v716_v27 = vsub.f32 %v708_v26, %v714_v50  ;;  %v69_v37 = vmul.u32 6, %v68_v34 }
 0x171   :  { %v717_v28 = vsel %vm519_vm2, %v715_v23, 0.0 }
 0x172   :  { %718 = vadd.xlane.f32.xlu0 %v717_v28  ;;  %v720_v9 = vsel %vm523_vm3, %v716_v27, 0.0  ;;  %v70_v41 = vsub.s32 %v1358_v10, %v69_v37  ;;  %vm1388_vm3 = vcmp.lt.s32.totalorder %v81_v62, 2 }
 0x173   :  { %721 = vadd.xlane.f32.xlu1 %v720_v9  ;;  %v561_v30 = vpop.xlane.xlu0 %560  ;;  %v527_v15 = vsel %vm1388_vm3, 0.0016666667, %v869_v13 }
 0x174   :  { %vm74_vm12 = vcmp.ne.s32.totalorder %v70_v41, 0  ;;  %vm76_vm13 = vcmp.lt.s32.totalorder %v70_v41, 0  ;;  %v80_v51 = vadd.s32 6, %v70_v41 }
 0x175   :  { %vm1378_vm0 = vmand %vm76_vm13, %vm74_vm12 }
 0x176   :  { %v82_v60 = vsel %vm1378_vm0, %v80_v51, %v70_v41  ;;  %vm85_vm13 = vmxor %vm1388_vm3, %vm870_vm11 }
 0x177   :  { %vm1384_vm2 = vcmp.lt.s32.totalorder %v82_v60, 2 }
 0x178   :  { %v528_v14 = vsel %vm1384_vm2, 0.0016666667, %v869_v13  ;;  %vm86_vm12 = vmxor %vm1384_vm2, %vm870_vm11 }
 0x179   :  { %v530_v19 = vsel %vm50_vm4, %v528_v14, 0.0  ;;  %vm88_vm14 = vmand %vm50_vm4, %vm86_vm12 }
 0x196   :  { %v564_v42 = vpop.xlane.xlu1 %563 }
 0x19d   :  { %v1368_v35 = vpop.xlane.xlu0 %548 }
 0x19e   :  { %v583_v40 = vmul.f32 %v1368_v35, %v1368_v35 }
 0x1a0   :  { %v585_v44 = vmul.f32 0.006666667, %v583_v40 }
 0x1a2   :  { %v587_v54 = vsub.f32 %v561_v30, %v585_v44 }
 0x1a3   :  { %v1371_v39 = vpop.xlane.xlu0 %551 }
 0x1a4   :  { %v584_v47 = vmul.f32 %v1371_v39, %v1371_v39  ;;  %v589_v63 = vmax.f32 %v587_v54, 0.0 }
 0x1a6   :  { %v586_v56 = vmul.f32 0.006666667, %v584_v47 }
 0x1a7   :  { %v567_v48 = vpop.xlane.xlu0 %566 }
 0x1a8   :  { %v588_v0 = vsub.f32 %v564_v42, %v586_v56 }
 0x1aa   :  { %v590_v11 = vmax.f32 %v588_v0, 0.0 }
 0x1ab   :  { %v573_v61 = vpop.xlane.xlu0 %572 }
 0x1af   :  { %v522_v16 = vpop.xlane.xlu0 %521 }
 0x1b0   :  { %v531_v20 = vmul.f32 %v527_v15, %v522_v16 }
 0x1b2   :  { %v534_v24 = vsel %vm533_vm5, %v531_v20, 0.0 }
 0x1c8   :  { %v555_v45 = vpop.xlane.xlu1 %554 }
 0x1c9   :  { %v591_v49 = vmul.f32 %v555_v45, %v555_v45  ;;  %v577_v36 = vmul.f32 %v555_v45, %v1368_v35  ;;  %v89_v35 = vsel %vm85_vm13, 1.0, %v868_v1 }
 0x1cb   :  { %v593_v57 = vmul.f32 0.006666667, %v591_v49  ;;  %v579_v37 = vmul.f32 0.006666667, %v577_v36 }
 0x1cc   :  { %v558_v58 = vpop.xlane.xlu1 %557 }
 0x1cd   :  { %v595_v46 = vsub.f32 %v567_v48, %v593_v57  ;;  %v592_v59 = vmul.f32 %v558_v58, %v558_v58  ;;  %v578_v38 = vmul.f32 %v558_v58, %v1371_v39  ;;  %v581_v40 = vsub.f32 %v573_v61, %v579_v37 }
 0x1ce   :  { %v90_v39 = vsel %vm88_vm14, 1.0, %v868_v1 }
 0x1cf   :  { %v597_v2 = vmax.f32 %v595_v46, 0.0  ;;  %v594_v3 = vmul.f32 0.006666667, %v592_v59  ;;  %v580_v42 = vmul.f32 0.006666667, %v578_v38 }
 0x1d0   :  { %v570_v4 = vpop.xlane.xlu1 %569 }
 0x1d1   :  { %v599_v7 = vmul.f32 %v597_v2, %v589_v63  ;;  %v596_v8 = vsub.f32 %v570_v4, %v594_v3 }
 0x1d3   :  { %838 = vrsqrt.f32 %v599_v7  ;;  %v598_v12 = vmax.f32 %v596_v8, 0.0  ;;  %vm603_vm7 = vcmp.eq.f32.partialorder %v599_v7, inf  ;;  %v606_v28 = vand.u32 2147483648, %v599_v7 }
 0x1d4   :  { %v576_v17 = vpop.xlane.xlu1 %575  ;;  %vm605_vm8 = vcmp.eq.f32.partialorder %v599_v7, 0.0 }
 0x1d5   :  { %v600_v18 = vmul.f32 %v598_v12, %v590_v11  ;;  %v582_v44 = vsub.f32 %v576_v17, %v580_v42 }
 0x1d7   :  { %840 = vrsqrt.f32 %v600_v18  ;;  %vm610_vm9 = vcmp.eq.f32.partialorder %v600_v18, inf  ;;  %v613_v55 = vand.u32 2147483648, %v600_v18  ;;  %vm612_vm10 = vcmp.eq.f32.partialorder %v600_v18, 0.0 }
 0x1d8   :  { %v526_v21 = vpop.xlane.xlu1 %525 }
 0x1d9   :  { %v532_v22 = vmul.f32 %v530_v19, %v526_v21 }
 0x1db   :  { %v536_v26 = vsel %vm535_vm6, %v532_v22, 0.0 }
 0x1dc   :  { %v537_v50 = vadd.f32 %v536_v26, %v534_v24 }
 0x1de   :  { %538 = vadd.xlane.f32.xlu0 %v537_v50 }
 0x1e0   :  { %v839_v23 = vpop.eup %838 }
 0x1e1   :  { %v602_v27 = vmul.f32 %v839_v23, %v599_v7 }
 0x1e3   :  { %v604_v9 = vsel %vm603_vm7, %v599_v7, %v602_v27 }
 0x1e4   :  { %v841_v29 = vpop.eup %840  ;;  %v607_v31 = vsel %vm605_vm8, %v606_v28, %v604_v9 }
 0x1e5   :  { %v609_v32 = vmul.f32 %v841_v29, %v600_v18  ;;  %v615_v33 = vadd.f32 1e-08, %v607_v31 }
 0x1e7   :  { %v611_v25 = vsel %vm610_vm9, %v600_v18, %v609_v32  ;;  %842 = vrcp.f32 %v615_v33 }
 0x1e8   :  { %v614_v30 = vsel %vm612_vm10, %v613_v55, %v611_v25 }
 0x1e9   :  { %v616_v34 = vadd.f32 1e-08, %v614_v30 }
 0x1eb   :  { %844 = vrcp.f32 %v616_v34 }
 0x1f4   :  { %v843_v41 = vpop.eup %842 }
 0x1f5   :  { %v619_v43 = vmul.f32 %v843_v41, %v581_v40 }
 0x1f7   :  { %v621_v45 = vmul.f32 %v619_v43, %v89_v35 }
 0x1f8   :  { %v845_v47 = vpop.eup %844 }
 0x1f9   :  { %v620_v48 = vmul.f32 %v845_v47, %v582_v44  ;;  %v623_v56 = vsel %vm533_vm5, %v621_v45, 0.0 }
 0x1fb   :  { %v719_v49 = vpop.xlane.xlu0 %718  ;;  %v622_v51 = vmul.f32 %v620_v48, %v90_v39 }
 0x1fc   :  { %v723_v52 = vmul.f32 %v719_v49, %v89_v35  ;;  %v722_v53 = vpop.xlane.xlu1 %721 }
 0x1fd   :  { %v724_v54 = vmul.f32 %v722_v53, %v90_v39  ;;  %v624_v57 = vsel %vm535_vm6, %v622_v51, 0.0 }
 0x1fe   :  { %v625_v58 = vadd.f32 %v624_v57, %v623_v56  ;;  %v725_v10 = vsel %vm533_vm5, %v723_v52, 0.0 }
 0x1ff   :  { %v726_v46 = vsel %vm535_vm6, %v724_v54, 0.0 }
 0x200   :  { %626 = vadd.xlane.f32.xlu1 %v625_v58  ;;  %v727_v59 = vadd.f32 %v726_v46, %v725_v10 }
 0x202   :  { %728 = vadd.xlane.f32.xlu0 %v727_v59 }
 0x267   :  { %v539_v1 = vpop.xlane.xlu0 %538 }
 0x268   :  { %v540_v60 = vrot.slane %v539_v1, 4 }
 0x26a   :  { %v541_v61 = vadd.f32 %v540_v60, %v539_v1 }
 0x26c   :  { %v542_v62 = vrot.slane %v541_v61, 2 }
 0x26e   :  { %v543_v63 = vadd.f32 %v542_v62, %v541_v61 }
 0x270   :  { %v544_v0 = vrot.slane %v543_v63, 1 }
 0x272   :  { %v545_v2 = vadd.f32 %v544_v0, %v543_v63 }
 0x274   :  { %812 = vpush %v545_v2 }
 0x289   :  { %v627_v3 = vpop.xlane.xlu1 %626 }
 0x28a   :  { %v628_v4 = vrot.slane %v627_v3, 4 }
 0x28b   :  { %v729_v5 = vpop.xlane.xlu0 %728 }
 0x28c   :  { %v629_v6 = vadd.f32 %v628_v4, %v627_v3  ;;  %v730_v7 = vrot.slane %v729_v5, 4 }
 0x28e   :  { %v630_v8 = vrot.slane %v629_v6, 2  ;;  %v731_v11 = vadd.f32 %v730_v7, %v729_v5 }
 0x290   :  { %v631_v12 = vadd.f32 %v630_v8, %v629_v6  ;;  %v732_v13 = vrot.slane %v731_v11, 2 }
 0x292   :  { %v733_v14 = vadd.f32 %v732_v13, %v731_v11  ;;  %v632_v15 = vrot.slane %v631_v12, 1 }
 0x294   :  { %v633_v16 = vadd.f32 %v632_v15, %v631_v12  ;;  %v734_v17 = vrot.slane %v733_v14, 1 }
 0x296   :  { %814 = vpush %v633_v16  ;;  %v735_v18 = vadd.f32 %v734_v17, %v733_v14 }
 0x298   :  { %816 = vpush %v735_v18 }
 0x2a5   :  { %s813_s0 = spop %812 }
 0x2c7   :  { %s815_s1 = spop %814 }
 0x2c8   :  { %s635_s11 = smul.f32 0.125, %s815_s1 }
 0x2c9   :  { %s817_s12 = spop %816 }
 0x2ca   :  { %s636_s15 = ssub.f32 %s813_s0, %s635_s11  ;;  %s737_s16 = smul.f32 0.00083333335, %s817_s12 }
 0x2cc   :  { %s738_s17 = sadd.f32 %s737_s16, %s636_s15 }
 0x2ce   :  { %v739_v19 = vstv %s738_s17 }
 0x2cf   :  { %740 = vst [vmem:[#allocation2] sm:$0xff] %v739_v19 }
 0x2d0   :  { %857 = shalt.err (!%p854_p4)
}
 0x2d1   :  { %750 = dma.vmem_to_hbm [thread:$0]  %s748_s14, 128, %s1421_s3, [#allocation3]  }
 0x2d2   :  { %866 = dma.done.wait [#allocation3], 128  }
 0x2d3   :  { %867 = vsyncadd [#allocation3], 4294967168 }
 0x2d4   :  { %754 = vsyncpa [#allocation3], 1 }

</bundles_post_ra>
